<compile_context>
chip_gen: v7x
topology: tpu7x:2x2x1
jax: 0.10.0
libtpu: 0.0.40
codegen_flags: <defaults>
</compile_context>

<pallas_src>
import functools

import jax
import jax.numpy as jnp
from jax.experimental import pallas as pl
from jax.experimental.pallas import tpu as pltpu


def _round_up(a, m):
    return m * ((a + m - 1) // m)


# ---------------------------------------------------------------------------
# Pallas kernel (transposed layout: batch on the lane axis)
# ---------------------------------------------------------------------------
def _make_coupling_kernel(dim, half, hid, parity):
    """Kernel closure over the static geometry / parity bit."""
    H2 = 2 * hid
    r0, r1, r2, r3 = 0, H2, 2 * H2, 3 * H2   # row offsets of the 4 fused layers

    def kernel(w_ref, b_ref, xT_ref, out_ref):
        xT = xT_ref[...]                      # (dim, BT) f32, lane-dense
        if parity:
            x0 = xT[half:dim, :]              # conditioner input
            x1 = xT[0:half, :]                # transformed half
        else:
            x0 = xT[0:half, :]
            x1 = xT[half:dim, :]

        def lrelu(h):
            return jnp.where(h > 0, h, 0.2 * h)

        def layer(h, row, rows, cols, act):
            # Static views into the packed parameter slabs (zero-cost).
            w = w_ref[row:row + rows, 0:cols]            # bf16 (rows, cols)
            b = b_ref[row:row + rows, :]                 # f32  (rows, 1)
            h = jnp.dot(w, h.astype(jnp.bfloat16),
                        preferred_element_type=jnp.float32) + b
            return lrelu(h) if act else h

        # Fused s/t conditioner: layer 0 is [Ws0; Wt0], layers 1-3 block-diagonal.
        h = layer(x0, r0, H2, half, True)                # (2*hid, BT)
        h = layer(h, r1, H2, H2, True)
        h = layer(h, r2, H2, H2, True)
        st = layer(h, r3, 2 * half, H2, False)           # (2*half, BT)

        s = st[0:half, :]
        t = st[half:2 * half, :]
        z1 = jnp.exp(s) * x1 + t                         # f32 affine update

        # Full z^T written in-kernel (pass-through half included), parity static.
        if parity:
            out_ref[0:half, :] = z1
            out_ref[half:dim, :] = x0
        else:
            out_ref[0:half, :] = x0
            out_ref[half:dim, :] = z1
        # log_det as the extra row of the single fused output.
        out_ref[dim:dim + 1, :] = jnp.sum(s, axis=0, keepdims=True)

    return kernel


def _pallas_coupling_T(xT, w_packed, b_packed, dim, half, hid, parity, batch_tile):
    """xT: (dim, Bp) f32 with Bp % batch_tile == 0.

    Returns (dim+1, Bp): rows [0:dim] = z^T, row dim = log_det.
    Reusable as-is for stacked flows that keep the transposed layout.
    """
    _, Bp = xT.shape
    rows, wcols = w_packed.shape
    grid = (Bp // batch_tile,)
    kernel = _make_coupling_kernel(dim, half, hid, parity)

    return pl.pallas_call(
        kernel,
        out_shape=jax.ShapeDtypeStruct((dim + 1, Bp), jnp.float32),
        grid=grid,
        in_specs=[
            # Packed params: constant index_map -> DMA'd once, VMEM-resident.
            pl.BlockSpec((rows, wcols), lambda i: (0, 0)),
            pl.BlockSpec((rows, 1), lambda i: (0, 0)),
            # Batch-tiled transposed activations (batch on lanes).
            pl.BlockSpec((dim, batch_tile), lambda i: (0, i)),
        ],
        out_specs=pl.BlockSpec((dim + 1, batch_tile), lambda i: (0, i)),
        compiler_params=pltpu.CompilerParams(
            dimension_semantics=("parallel",)),
    )(w_packed, b_packed, xT)


def _choose_batch_tile(B, desired):
    """Large lane tiles (multiple of 128, default 512=2*256), but keep >=2 grid
    steps when the batch allows it so v7x can shard across its 2 TensorCores."""
    Bp128 = _round_up(B, 128)
    bt = max(128, min((desired // 128) * 128, Bp128))
    if Bp128 // bt < 2 and Bp128 >= 256:
        bt = max(128, ((Bp128 // 2) // 128) * 128)
    return bt, _round_up(B, bt)


# ---------------------------------------------------------------------------
# AffineHalfFlow forward (jitted wrapper, packed params precomputed once)
# ---------------------------------------------------------------------------
@functools.partial(jax.jit, static_argnames=("half", "hid", "parity", "batch_tile"))
def affine_half_flow_forward(x, w_packed, b_packed, *, half, hid, parity,
                             batch_tile=512):
    """x: (B, dim) float32. Returns (z (B, dim), log_det (B,))."""
    B, dim = x.shape
    assert dim == 2 * half
    bt, Bp = _choose_batch_tile(B, batch_tile)

    xT = x.T                                   # single entry transpose
    if Bp != B:
        xT = jnp.pad(xT, ((0, 0), (0, Bp - B)))

    outT = _pallas_coupling_T(xT, w_packed, b_packed, dim, half, hid, parity, bt)
    z = outT[:dim, :B].T                       # single exit transpose
    log_det = outT[dim, :B]
    return z, log_det


# ---------------------------------------------------------------------------
# Parameter init (PyTorch nn.Linear default: U(-1/sqrt(fan_in), 1/sqrt(fan_in)))
# Weights kept in PyTorch (out, in) layout — consumed directly as W @ h.
# ---------------------------------------------------------------------------
def init_mlp_params(key, in_size, out_size, hid_size):
    sizes = [(in_size, hid_size), (hid_size, hid_size),
             (hid_size, hid_size), (hid_size, out_size)]
    params = []
    for fan_in, fan_out in sizes:
        key, kw, kb = jax.random.split(key, 3)
        bound = 1.0 / jnp.sqrt(fan_in)
        W = jax.random.uniform(kw, (fan_out, fan_in), jnp.float32, -bound, bound)
        b = jax.random.uniform(kb, (fan_out,), jnp.float32, -bound, bound)
        params.append((W, b))
    return params


def pack_conditioner_params(s_params, t_params):
    """Fuse s_cond / t_cond params into one bf16 weight slab + one f32 bias col.
    Call ONCE at init time; the result is reused by every forward call."""
    (Ws0, bs0), (Ws1, bs1), (Ws2, bs2), (Ws3, bs3) = s_params
    (Wt0, bt0), (Wt1, bt1), (Wt2, bt2), (Wt3, bt3) = t_params
    hid = Ws0.shape[0]
    half = Ws0.shape[1]
    H2 = 2 * hid
    wcols = max(H2, half)

    def pad_cols(w):
        return jnp.pad(w, ((0, 0), (0, wcols - w.shape[1])))

    def blkdiag(a, b):
        ra, ca = a.shape
        rb, cb = b.shape
        top = jnp.concatenate([a, jnp.zeros((ra, cb), a.dtype)], axis=1)
        bot = jnp.concatenate([jnp.zeros((rb, ca), b.dtype), b], axis=1)
        return jnp.concatenate([top, bot], axis=0)

    W0 = pad_cols(jnp.concatenate([Ws0, Wt0], axis=0))   # (2*hid, wcols)
    W1 = pad_cols(blkdiag(Ws1, Wt1))                      # (2*hid, wcols)
    W2 = pad_cols(blkdiag(Ws2, Wt2))                      # (2*hid, wcols)
    W3 = pad_cols(blkdiag(Ws3, Wt3))                      # (2*half, wcols)
    w_packed = jnp.concatenate([W0, W1, W2, W3], axis=0)  # (3*2*hid+2*half, wcols)

    b_packed = jnp.concatenate([
        jnp.concatenate([bs0, bt0]),
        jnp.concatenate([bs1, bt1]),
        jnp.concatenate([bs2, bt2]),
        jnp.concatenate([bs3, bt3]),
    ]).reshape(-1, 1)                                     # (3*2*hid+2*half, 1)

    # bf16 weights (half the DMA/VMEM, ~3x fewer MXU passes), f32 biases.
    return w_packed.astype(jnp.bfloat16), b_packed.astype(jnp.float32)


# ---------------------------------------------------------------------------
# Pure-JAX f32 reference for correctness checking
# ---------------------------------------------------------------------------
def _mlp_ref(h, params):
    for i, (W, b) in enumerate(params):
        h = h @ W.T + b
        if i < len(params) - 1:
            h = jnp.where(h > 0, h, 0.2 * h)
    return h


def _reference_forward(x, s_params, t_params, parity):
    x0, x1 = jnp.split(x, 2, axis=1)
    if parity:
        x0, x1 = x1, x0
    s = _mlp_ref(x0, s_params)
    t = _mlp_ref(x0, t_params)
    z1 = jnp.exp(s) * x1 + t
    z0 = x0
    if parity:
        z0, z1 = z1, z0
    return jnp.concatenate([z0, z1], axis=1), jnp.sum(s, axis=1)


if __name__ == "__main__":
    # Module-consistent small shapes: dim=8 (halves of 4), hid_size=24 (default),
    # batch 256 so the lane-tiled "parallel" grid actually has >= 2 steps.
    B, DIM, HID = 256, 8, 24

    key = jax.random.PRNGKey(0)
    kx, ks, kt = jax.random.split(key, 3)

    x = jax.random.normal(kx, (B, DIM), jnp.float32)
    s_params = init_mlp_params(ks, DIM // 2, DIM // 2, HID)
    t_params = init_mlp_params(kt, DIM // 2, DIM // 2, HID)

    # Packed once at init time (NOT per forward call).
    w_packed, b_packed = pack_conditioner_params(s_params, t_params)

    for parity in (0, 1):
        z, log_det = affine_half_flow_forward(
            x, w_packed, b_packed, half=DIM // 2, hid=HID, parity=parity)
        z = jax.block_until_ready(z)
        log_det = jax.block_until_ready(log_det)

        z_ref, ld_ref = _reference_forward(x, s_params, t_params, parity)
        assert z.shape == (B, DIM) and log_det.shape == (B,)
        # bf16 matmul operands (f32 accumulation) -> slightly looser tolerance.
        assert jnp.allclose(z, z_ref, atol=5e-2, rtol=5e-2), \
            float(jnp.max(jnp.abs(z - z_ref)))
        assert jnp.allclose(log_det, ld_ref, atol=5e-2, rtol=5e-2), \
            float(jnp.max(jnp.abs(log_det - ld_ref)))

    print("KERNEL_OK")
</pallas_src>

<mosaic_0001>
module attributes {stable_mosaic.version = 11 : i64} {
  func.func @kernel(%arg0: i32, %arg1: memref<152x48xbf16, #tpu.memory_space<vmem>>, %arg2: memref<152x1xf32, #tpu.memory_space<vmem>>, %arg3: memref<8x128xf32, #tpu.memory_space<vmem>>, %arg4: memref<9x128xf32, #tpu.memory_space<vmem>>) attributes {dimension_semantics = [#tpu.dimension_semantics<parallel>], iteration_bounds = array<i64: 2>, scalar_prefetch = 0 : i64, scratch_operands = 0 : i64, tpu.core_type = #tpu.core_type<tc>, window_params = [{pipeline_mode = #tpu.pipeline_mode<synchronous>, transform_indices = @transform_0, window_bounds = array<i64: 152, 48>}, {pipeline_mode = #tpu.pipeline_mode<synchronous>, transform_indices = @transform_1, window_bounds = array<i64: 152, 1>}, {transform_indices = @transform_2, window_bounds = array<i64: 8, 128>}, {transform_indices = @transform_3, window_bounds = array<i64: 9, 128>}]} {
    %c0 = arith.constant 0 : index
    %c0_0 = arith.constant 0 : index
    %0 = vector.load %arg3[%c0, %c0_0] : memref<8x128xf32, #tpu.memory_space<vmem>>, vector<8x128xf32>
    %1 = vector.extract_strided_slice %0 {offsets = [0, 0], sizes = [4, 128], strides = [1, 1]} : vector<8x128xf32> to vector<4x128xf32>
    %2 = vector.extract_strided_slice %0 {offsets = [4, 0], sizes = [4, 128], strides = [1, 1]} : vector<8x128xf32> to vector<4x128xf32>
    %c0_1 = arith.constant 0 : index
    %c0_2 = arith.constant 0 : index
    %3 = vector.load %arg1[%c0_1, %c0_2] : memref<152x48xbf16, #tpu.memory_space<vmem>>, vector<48x4xbf16>
    %c0_3 = arith.constant 0 : index
    %c0_4 = arith.constant 0 : index
    %4 = vector.load %arg2[%c0_3, %c0_4] : memref<152x1xf32, #tpu.memory_space<vmem>>, vector<48x1xf32>
    %5 = arith.truncf %1 : vector<4x128xf32> to vector<4x128xbf16>
    %cst = arith.constant dense<0.000000e+00> : vector<48x128xf32>
    %6 = tpu.matmul %3, %5, %cst {dimension_numbers = #tpu.dot_dimension_numbers<[1], [0], [0], [1], [0, 0, 1, 1], [], []>} : vector<48x4xbf16>, vector<4x128xbf16>, vector<48x128xf32> -> vector<48x128xf32>
    %7 = vector.broadcast %4 : vector<48x1xf32> to vector<48x128xf32>
    %8 = arith.addf %6, %7 : vector<48x128xf32>
    %cst_5 = arith.constant 0.000000e+00 : f32
    %9 = vector.broadcast %cst_5 : f32 to vector<48x128xf32>
    %10 = arith.cmpf ogt, %8, %9 : vector<48x128xf32>
    %cst_6 = arith.constant 2.000000e-01 : f32
    %11 = vector.broadcast %cst_6 : f32 to vector<48x128xf32>
    %12 = arith.mulf %11, %8 : vector<48x128xf32>
    %13 = arith.select %10, %8, %12 : vector<48x128xi1>, vector<48x128xf32>
    %c48 = arith.constant 48 : index
    %c0_7 = arith.constant 0 : index
    %14 = vector.load %arg1[%c48, %c0_7] : memref<152x48xbf16, #tpu.memory_space<vmem>>, vector<48x48xbf16>
    %c48_8 = arith.constant 48 : index
    %c0_9 = arith.constant 0 : index
    %15 = vector.load %arg2[%c48_8, %c0_9] : memref<152x1xf32, #tpu.memory_space<vmem>>, vector<48x1xf32>
    %16 = arith.truncf %13 : vector<48x128xf32> to vector<48x128xbf16>
    %cst_10 = arith.constant dense<0.000000e+00> : vector<48x128xf32>
    %17 = tpu.matmul %14, %16, %cst_10 {dimension_numbers = #tpu.dot_dimension_numbers<[1], [0], [0], [1], [0, 0, 1, 1], [], []>} : vector<48x48xbf16>, vector<48x128xbf16>, vector<48x128xf32> -> vector<48x128xf32>
    %18 = vector.broadcast %15 : vector<48x1xf32> to vector<48x128xf32>
    %19 = arith.addf %17, %18 : vector<48x128xf32>
    %cst_11 = arith.constant 0.000000e+00 : f32
    %20 = vector.broadcast %cst_11 : f32 to vector<48x128xf32>
    %21 = arith.cmpf ogt, %19, %20 : vector<48x128xf32>
    %cst_12 = arith.constant 2.000000e-01 : f32
    %22 = vector.broadcast %cst_12 : f32 to vector<48x128xf32>
    %23 = arith.mulf %22, %19 : vector<48x128xf32>
    %24 = arith.select %21, %19, %23 : vector<48x128xi1>, vector<48x128xf32>
    %c96 = arith.constant 96 : index
    %c0_13 = arith.constant 0 : index
    %25 = vector.load %arg1[%c96, %c0_13] : memref<152x48xbf16, #tpu.memory_space<vmem>>, vector<48x48xbf16>
    %c96_14 = arith.constant 96 : index
    %c0_15 = arith.constant 0 : index
    %26 = vector.load %arg2[%c96_14, %c0_15] : memref<152x1xf32, #tpu.memory_space<vmem>>, vector<48x1xf32>
    %27 = arith.truncf %24 : vector<48x128xf32> to vector<48x128xbf16>
    %cst_16 = arith.constant dense<0.000000e+00> : vector<48x128xf32>
    %28 = tpu.matmul %25, %27, %cst_16 {dimension_numbers = #tpu.dot_dimension_numbers<[1], [0], [0], [1], [0, 0, 1, 1], [], []>} : vector<48x48xbf16>, vector<48x128xbf16>, vector<48x128xf32> -> vector<48x128xf32>
    %29 = vector.broadcast %26 : vector<48x1xf32> to vector<48x128xf32>
    %30 = arith.addf %28, %29 : vector<48x128xf32>
    %cst_17 = arith.constant 0.000000e+00 : f32
    %31 = vector.broadcast %cst_17 : f32 to vector<48x128xf32>
    %32 = arith.cmpf ogt, %30, %31 : vector<48x128xf32>
    %cst_18 = arith.constant 2.000000e-01 : f32
    %33 = vector.broadcast %cst_18 : f32 to vector<48x128xf32>
    %34 = arith.mulf %33, %30 : vector<48x128xf32>
    %35 = arith.select %32, %30, %34 : vector<48x128xi1>, vector<48x128xf32>
    %c144 = arith.constant 144 : index
    %c0_19 = arith.constant 0 : index
    %36 = vector.load %arg1[%c144, %c0_19] : memref<152x48xbf16, #tpu.memory_space<vmem>>, vector<8x48xbf16>
    %c144_20 = arith.constant 144 : index
    %c0_21 = arith.constant 0 : index
    %37 = vector.load %arg2[%c144_20, %c0_21] : memref<152x1xf32, #tpu.memory_space<vmem>>, vector<8x1xf32>
    %38 = arith.truncf %35 : vector<48x128xf32> to vector<48x128xbf16>
    %cst_22 = arith.constant dense<0.000000e+00> : vector<8x128xf32>
    %39 = tpu.matmul %36, %38, %cst_22 {dimension_numbers = #tpu.dot_dimension_numbers<[1], [0], [0], [1], [0, 0, 1, 1], [], []>} : vector<8x48xbf16>, vector<48x128xbf16>, vector<8x128xf32> -> vector<8x128xf32>
    %40 = vector.broadcast %37 : vector<8x1xf32> to vector<8x128xf32>
    %41 = arith.addf %39, %40 : vector<8x128xf32>
    %42 = vector.extract_strided_slice %41 {offsets = [0, 0], sizes = [4, 128], strides = [1, 1]} : vector<8x128xf32> to vector<4x128xf32>
    %43 = vector.extract_strided_slice %41 {offsets = [4, 0], sizes = [4, 128], strides = [1, 1]} : vector<8x128xf32> to vector<4x128xf32>
    %44 = math.exp %42 : vector<4x128xf32>
    %45 = arith.mulf %44, %2 : vector<4x128xf32>
    %46 = arith.addf %45, %43 : vector<4x128xf32>
    %c0_23 = arith.constant 0 : index
    %c0_24 = arith.constant 0 : index
    %47 = vector.load %arg4[%c0_23, %c0_24] : memref<9x128xf32, #tpu.memory_space<vmem>>, vector<4x128xf32>
    tpu.vector_store %arg4[%c0_23, %c0_24], %1 {strides = array<i32>} : memref<9x128xf32, #tpu.memory_space<vmem>>, vector<4x128xf32>,
    %c4 = arith.constant 4 : index
    %c0_25 = arith.constant 0 : index
    %48 = vector.load %arg4[%c4, %c0_25] : memref<9x128xf32, #tpu.memory_space<vmem>>, vector<4x128xf32>
    tpu.vector_store %arg4[%c4, %c0_25], %46 {strides = array<i32>} : memref<9x128xf32, #tpu.memory_space<vmem>>, vector<4x128xf32>,
    %cst_26 = arith.constant dense<0.000000e+00> : vector<128xf32>
    %49 = vector.multi_reduction <add>, %42, %cst_26 [0] : vector<4x128xf32> to vector<128xf32>
    %50 = vector.shape_cast %49 : vector<128xf32> to vector<1x128xf32>
    %c8 = arith.constant 8 : index
    %c0_27 = arith.constant 0 : index
    %51 = vector.load %arg4[%c8, %c0_27] : memref<9x128xf32, #tpu.memory_space<vmem>>, vector<1x128xf32>
    tpu.vector_store %arg4[%c8, %c0_27], %50 {strides = array<i32>} : memref<9x128xf32, #tpu.memory_space<vmem>>, vector<1x128xf32>,
    return
  }
  func.func @transform_0(%arg0: i32) -> (i32, i32) {
    %c0_i32 = arith.constant 0 : i32
    %c0_i32_0 = arith.constant 0 : i32
    %c0_i32_1 = arith.constant 0 : i32
    return %c0_i32, %c0_i32_0 : i32, i32
  }
  func.func @transform_1(%arg0: i32) -> (i32, i32) {
    %c0_i32 = arith.constant 0 : i32
    %c0_i32_0 = arith.constant 0 : i32
    %c0_i32_1 = arith.constant 0 : i32
    return %c0_i32, %c0_i32_0 : i32, i32
  }
  func.func @transform_2(%arg0: i32) -> (i32, i32) {
    %c0_i32 = arith.constant 0 : i32
    %c0_i32_0 = arith.constant 0 : i32
    return %c0_i32, %arg0 : i32, i32
  }
  func.func @transform_3(%arg0: i32) -> (i32, i32) {
    %c0_i32 = arith.constant 0 : i32
    %c0_i32_0 = arith.constant 0 : i32
    return %c0_i32, %arg0 : i32, i32
  }
}

</mosaic_0001>

<bundles_post_ra>
// kernel: affine_half_flow_forward.1
= control target key start
LH: loop header
LB: loop body
LE: loop exit
PB: predicated region body
PF: predicated region fallthrough
CT: control target
= control target key end

     0   :  { %s968_s12 = smov 0   ;;  %s970_s13 = smov 0   ;;  %s1156_s0 = inlined_call_operand.vmem [shape: bf16[152,48], index: 0, kind: input, shape index: {}]   ;;  %s1157_s1 = inlined_call_operand.vmem [shape: f32[152,1], index: 1, kind: input, shape index: {}]   ;;  %s1158_s2 = inlined_call_operand.vmem [shape: f32[8,256], index: 2, kind: input, shape index: {}]   ;;  %s1159_s3 = inlined_call_operand.vmem [shape: f32[9,256], index: 3, kind: output, shape index: {}]  }
   0x1   :  { %s972_s14 = smov 0  }
   0x2 LB: > { %s979_s15 = sadd.s32 4294967295, %s943_s14   ;;  %s981_s16 = sadd.s32 1, %s943_s14   ;;  %s943_s14 = sphi %s972_s14, %s1163_s14   ;;  %s939_s13 = sphi %s970_s13, %s1162_s13   ;;  %s935_s12 = sphi %s968_s12, %s1161_s12  }
   0x3   : > { %s85_s17 = ssub.s32 %s943_s14, %s981_s16  ;;  %s88_s18 = sadd.s32 1, %s939_s13 }
   0x4   : > { %p86_p0 = scmp.eq.s32.totalorder %s85_s17, 0  ;;  %p98_p1 = scmp.ne.s32.totalorder %s939_s13, %s935_s12 }
   0x5   : > { %p99_p2 = scmp.eq.s32.totalorder %s979_s15, 1  ;;  %p773_p3 = scmp.ge.s32.totalorder %s943_s14, 1 }
   0x6   : > { %s988_s19 = scalar_select %p86_p0, %s939_s13, %s88_s18  }
   0x7   : > { %p990_p4 = por %p99_p2, %p98_p1  ;;  %p136_p5 = scmp.lt.s32.totalorder %s943_s14, 3 }
   0x9   : > { %p137_p6 = pnand %p773_p3, %p136_p5 }
   0xa   : > { %p158_p7 = scmp.lt.s32.totalorder (!%p137_p6), %s979_s15, 1  ;;  %v945_v0 = vmov (!%p137_p6), 0.0   ;;  %s155_s21 = sand.u32 (!%p137_p6), 1, %s935_s12   ;;  %vm946_vm0 = vmmov (!%p137_p6), 0   ;;  %v170_v1 = vld [vmem:[%s1157_s1] sm:$0xff] (!%p137_p6)  ;;  %v172_v2 = vld [vmem:[%s1157_s1 + $0x10] sm:$0xff] (!%p137_p6) }
   0xb   : > { %140 = sbr.rel (%p137_p6) target bundleno = 985 (0x3d9), region = 32  ;;  %819 = vmatprep.subr.bf16.mxu0 (!%p137_p6), %v945_v0  ;;  %879 = vmatprep.subr.bf16.mxu1 (!%p137_p6), %v945_v0  ;;  %s774_s23 = sshll.u32 (!%p137_p6), %s155_s21, 4  ;;  %v947_v3 = vmov (!%p137_p6), 0   ;;  %vm232_vm1 = vcmask (!%p137_p6), 1041408   ;;  %v171_v5 = vld [vmem:[%s1157_s1 + $0x8] sm:$0xff] (!%p137_p6)  ;;  %v173_v6 = vld [vmem:[%s1157_s1 + $0x18] sm:$0xff] (!%p137_p6) }
   0xc   : > { %821 = vmatprep.mubr.msk.bf16.mxu0 (!%p137_p6), %vm946_vm0, %v945_v0  ;;  %829 = vmatprep.mubr.msk.bf16.mxu1 (!%p137_p6), %vm946_vm0, %v945_v0  ;;  %s1021_s9 = scalar_lea.vmem (!%p137_p6), [#allocation2], %s774_s23  ;;  %v910_v8 = vld [vmem:[%s1156_s0] sm:$0xff] (!%p137_p6)   ;;  %vm222_vm2 = vcmask (!%p137_p6), 31744   ;;  %v911_v10 = vld [vmem:[%s1156_s0 + $0x10] sm:$0xff] (!%p137_p6)   ;;  %v175_v12 = vld [vmem:[%s1157_s1 + $0x28] sm:$0xff] (!%p137_p6)  ;;  %vm371_vm9 = vcmask (!%p137_p6), 392192  }
   0xd   : > { %908 = vset.pattern.permute.xlu0 (!%p137_p6), %v947_v3  ;;  %909 = vset.pattern.permute.xlu1 (!%p137_p6), %v947_v3  ;;  %v174_v11 = vld [vmem:[%s1157_s1 + $0x20] sm:$0xff] (!%p137_p6)  ;;  %v317_v13 = vld [vmem:[%s1157_s1 + $0x30] sm:$0xff] (!%p137_p6)  ;;  %v318_v14 = vld [vmem:[%s1157_s1 + $0x38] sm:$0xff] (!%p137_p6) }
   0xe   : > { %179 = vperm.xlu0 (!%p137_p6), %908, %v170_v1   ;;  %189 = vperm.xlu1 (!%p137_p6), %909, %v172_v2   ;;  %v912_v15 = vld [vmem:[%s1156_s0 + $0x8] sm:$0xff] (!%p137_p6)   ;;  %v319_v16 = vld [vmem:[%s1157_s1 + $0x40] sm:$0xff] (!%p137_p6)  ;;  %v321_v18 = vld [vmem:[%s1157_s1 + $0x50] sm:$0xff] (!%p137_p6) }
   0xf   : > { %v320_v17 = vld [vmem:[%s1157_s1 + $0x48] sm:$0xff] (!%p137_p6)  ;;  %v322_v19 = vld [vmem:[%s1157_s1 + $0x58] sm:$0xff] (!%p137_p6)  ;;  %v462_v20 = vld [vmem:[%s1157_s1 + $0x60] sm:$0xff] (!%p137_p6) }
  0x10   : > { %v463_v21 = vld [vmem:[%s1157_s1 + $0x68] sm:$0xff] (!%p137_p6)  ;;  %v464_v22 = vld [vmem:[%s1157_s1 + $0x70] sm:$0xff] (!%p137_p6)  ;;  %v465_v23 = vld [vmem:[%s1157_s1 + $0x78] sm:$0xff] (!%p137_p6) }
  0x11   : > { %v466_v24 = vld [vmem:[%s1157_s1 + $0x80] sm:$0xff] (!%p137_p6)  ;;  %v467_v25 = vld [vmem:[%s1157_s1 + $0x88] sm:$0xff] (!%p137_p6)  ;;  %v601_v26 = vld [vmem:[%s1157_s1 + $0x90] sm:$0xff] (!%p137_p6) }
  0x12   : > { %s159_s22 = scalar_select %p158_p7, %s979_s15, 1  ;;  %184 = vperm.xlu0 %908, %v171_v5   ;;  %194 = vperm.xlu1 %909, %v173_v6   ;;  %v913_v3 = vld [vmem:[%s1156_s0 + $0x18] sm:$0xff]   ;;  %v914_v5 = vld [vmem:[%s1156_s0 + $0x20] sm:$0xff]   ;;  %v915_v6 = vld [vmem:[%s1156_s0 + $0x28] sm:$0xff]  }
  0x13   : > { %s796_s23 = sshll.u32 (%p990_p4), %s979_s15, 3 }
  0x14   : > { %s775_s28 = sshll.u32 %s159_s22, 3  ;;  %s682_s26 = scalar_lea.vmem (%p990_p4), %s1159_s3, %s796_s23 }
  0x15   : > { %s161_s4 = scalar_lea.vmem %s1158_s2, %s775_s28 }
  0x16   : > { %v1011_v4 = vld [vmem:[%s161_s4] sm:$0xff]  ;;  %199 = vperm.xlu0 %908, %v174_v11   ;;  %204 = vperm.xlu1 %909, %v175_v12  }
  0x17   : > { %v176_v7 = vpack.c.bf16 %v1011_v4, %v1011_v4  ;;  %663 = vst [vmem:[%s1021_s9] sm:$0xf] %v1011_v4 }
  0x19   : > { %v234_v9 = vsel %vm232_vm1, %v176_v7, 0 }
  0x1a   : > { %820 = vmatpush3.bf16.msra.mxu0 %v234_v9  ;;  %880 = vmatpush3.bf16.msra.mxu1 %v234_v9 }
  0x1b   : > { %833 = vmatprep.subr.bf16.mxu1 %v945_v0  ;;  %851 = vmatprep.subr.bf16.mxu0 %v945_v0 }
  0x1c   : > { %328 = vperm.xlu0 %908, %v317_v13   ;;  %333 = vperm.xlu1 %909, %v318_v14  }
  0x1d   : > { %822 = vmatmul.mubr.msk.bf16.vlgmr.msra.gmra.mrb[0].mxu0 %vm222_vm2, %v910_v8  ;;  %830 = vmatmul.mubr.msk.bf16.vlgmr.msra.gmra.mrb[0].mxu1 %vm222_vm2, %v911_v10 }
  0x1e   : > { %825 = vmatprep.mubr.msk.bf16.mxu0 %vm946_vm0, %v945_v0  ;;  %839 = vmatprep.mubr.msk.bf16.mxu1 %vm946_vm0, %v945_v0 }
  0x20   : > { %338 = vperm.xlu0 %908, %v319_v16   ;;  %343 = vperm.xlu1 %909, %v320_v17  }
  0x24   : > { %348 = vperm.xlu0 %908, %v321_v18   ;;  %353 = vperm.xlu1 %909, %v322_v19  }
  0x25   : > { %826 = vmatmul.mubr.msk.bf16.gmra.mrb[4].mxu0 %vm222_vm2, %v912_v15 }
  0x26   : > { %857 = vmatprep.mubr.msk.bf16.mxu0 %vm946_vm0, %v945_v0 }
  0x28   : > { %473 = vperm.xlu0 %908, %v462_v20   ;;  %478 = vperm.xlu1 %909, %v463_v21  }
  0x2c   : > { %483 = vperm.xlu0 %908, %v464_v22   ;;  %488 = vperm.xlu1 %909, %v465_v23  }
  0x30   : > { %493 = vperm.xlu0 %908, %v466_v24   ;;  %498 = vperm.xlu1 %909, %v467_v25  }
  0x34   : > { %607 = vperm.xlu0 %908, %v601_v26  }
  0x8d   : > { %v180_v27 = vpop.permute.xlu0 %179  ;;  %v190_v28 = vpop.permute.xlu1 %189 }
  0x91   : > { %v185_v29 = vpop.permute.xlu0 %184  ;;  %v195_v30 = vpop.permute.xlu1 %194 }
  0x95   : > { %v200_v31 = vpop.permute.xlu0 %199  ;;  %v205_v40 = vpop.permute.xlu1 %204 }
  0x9b   : > { %v329_v7 = vpop.permute.xlu0 %328  ;;  %v334_v11 = vpop.permute.xlu1 %333 }
  0x9f   : > { %v339_v19 = vpop.permute.xlu0 %338  ;;  %v344_v24 = vpop.permute.xlu1 %343 }
  0xf0   : > { %v270_v32 = vpop.f32.mrb[0].mxu0  ;;  %v286_v33 = vpop.f32.mrb[0].mxu1 }
  0xf1   : > { %v271_v34 = vadd.f32 %v270_v32, %v180_v27  ;;  %v287_v35 = vadd.f32 %v286_v33, %v200_v31  ;;  %v823_v36 = vpop.f32.mrb[1].mxu0  ;;  %v831_v37 = vpop.f32.mrb[1].mxu1 }
  0xf2   : > { %v273_v38 = vpop.f32.mrb[2].mxu0  ;;  %v289_v39 = vpop.f32.mrb[2].mxu1 }
  0xf3   : > { %v299_v41 = vmul.f32 0.2, %v271_v34  ;;  %v303_v42 = vmul.f32 0.2, %v287_v35  ;;  %v274_v43 = vadd.f32 %v273_v38, %v185_v29  ;;  %v290_v44 = vadd.f32 %v289_v39, %v205_v40  ;;  %v824_v45 = vpop.f32.mrb[3].mxu0  ;;  %v832_v46 = vpop.f32.mrb[3].mxu1 }
  0xf4   : > { %vm293_vm3 = vcmp.gt.f32.partialorder %v271_v34, 0.0  ;;  %vm297_vm4 = vcmp.gt.f32.partialorder %v287_v35, 0.0  ;;  %v349_v32 = vpop.permute.xlu0 %348  ;;  %v354_v37 = vpop.permute.xlu1 %353  ;;  %v916_v46 = vld [vmem:[%s1156_s0 + $0x30] sm:$0xff]  }
  0xf5   : > { %vm294_vm5 = vcmp.gt.f32.partialorder %v274_v43, 0.0  ;;  %v300_v47 = vmul.f32 0.2, %v274_v43  ;;  %vm298_vm6 = vcmp.gt.f32.partialorder %v290_v44, 0.0  ;;  %v304_v48 = vmul.f32 0.2, %v290_v44 }
  0xf6   : > { %v305_v49 = vsel %vm293_vm3, %v271_v34, %v299_v41  ;;  %v309_v50 = vsel %vm297_vm4, %v287_v35, %v303_v42 }
  0xf7   : > { %v306_v51 = vsel %vm294_vm5, %v274_v43, %v300_v47  ;;  %v310_v52 = vsel %vm298_vm6, %v290_v44, %v304_v48  ;;  %v917_v47 = vld [vmem:[%s1156_s0 + $0x38] sm:$0xff]   ;;  %v918_v48 = vld [vmem:[%s1156_s0 + $0x40] sm:$0xff]   ;;  %vm665_vm6 = vcmask 1043456  }
  0xf8   : > { %v278_v53 = vpop.f32.mrb[4].mxu0  ;;  %v323_v54 = vpack.c.bf16 %v306_v51, %v305_v49  ;;  %v325_v55 = vpack.c.bf16 %v310_v52, %v309_v50  ;;  %v474_v49 = vpop.permute.xlu0 %473 }
  0xf9   : > { %v279_v56 = vadd.f32 %v278_v53, %v190_v28  ;;  %v827_v57 = vpop.f32.mrb[5].mxu0  ;;  %v479_v53 = vpop.permute.xlu1 %478 }
  0xfa   : > { %v281_v58 = vpop.f32.mrb[6].mxu0  ;;  %834 = vmatpush3.bf16.msra.mxu1 %v323_v54 }
  0xfb   : > { %v301_v59 = vmul.f32 0.2, %v279_v56  ;;  %v282_v60 = vadd.f32 %v281_v58, %v195_v30  ;;  %v828_v61 = vpop.f32.mrb[7].mxu0  ;;  %vm295_vm7 = vcmp.gt.f32.partialorder %v279_v56, 0.0  ;;  %835 = vmatprep.subr.bf16.mxu1 %v945_v0 }
  0xfc   : > { %v484_v61 = vpop.permute.xlu0 %483 }
  0xfd   : > { %vm296_vm8 = vcmp.gt.f32.partialorder %v282_v60, 0.0  ;;  %v302_v62 = vmul.f32 0.2, %v282_v60  ;;  %v307_v63 = vsel %vm295_vm7, %v279_v56, %v301_v59 }
  0xff   : > { %v308_v1 = vsel %vm296_vm8, %v282_v60, %v302_v62 }
 0x100   : > { %v324_v2 = vpack.c.bf16 %v308_v1, %v307_v63 }
 0x102   : > { %836 = vmatpush3.bf16.msra.mxu1 %v324_v2 }
 0x103   : > { %837 = vmatprep.subr.bf16.mxu1 %v945_v0 }
 0x106   : > { %838 = vmatpush3.bf16.msra.mxu1 %v325_v55 }
 0x107   : > { %869 = vmatprep.subr.bf16.mxu1 %v945_v0 }
 0x109   : > { %840 = vmatmul.mubr.msk.bf16.vlgmr.msra.gmra.mrb[4].mxu1 %vm371_vm9, %v913_v3  ;;  %v489_v3 = vpop.permute.xlu1 %488 }
 0x10a   : > { %843 = vmatprep.mubr.msk.bf16.mxu1 %vm946_vm0, %v945_v0 }
 0x111   : > { %844 = vmatmul.mubr.msk.bf16.gmra.mrb[8].mxu1 %vm371_vm9, %v914_v5 }
 0x112   : > { %847 = vmatprep.mubr.msk.bf16.mxu1 %vm946_vm0, %v945_v0 }
 0x119   : > { %848 = vmatmul.mubr.msk.bf16.gmra.mrb[12].mxu1 %vm371_vm9, %v915_v6 }
 0x11a   : > { %875 = vmatprep.mubr.msk.bf16.mxu1 %vm946_vm0, %v945_v0 }
 0x1dc   : > { %v415_v8 = vpop.f32.mrb[4].mxu1 }
 0x1dd   : > { %v416_v9 = vadd.f32 %v415_v8, %v329_v7  ;;  %v841_v10 = vpop.f32.mrb[5].mxu1 }
 0x1de   : > { %v418_v12 = vpop.f32.mrb[6].mxu1 }
 0x1df   : > { %v444_v13 = vmul.f32 0.2, %v416_v9  ;;  %v419_v14 = vadd.f32 %v418_v12, %v334_v11  ;;  %v842_v15 = vpop.f32.mrb[7].mxu1  ;;  %vm438_vm10 = vcmp.gt.f32.partialorder %v416_v9, 0.0  ;;  %v494_v12 = vpop.permute.xlu0 %493 }
 0x1e1   : > { %vm439_vm11 = vcmp.gt.f32.partialorder %v419_v14, 0.0  ;;  %v445_v16 = vmul.f32 0.2, %v419_v14  ;;  %v450_v17 = vsel %vm438_vm10, %v416_v9, %v444_v13 }
 0x1e3   : > { %v451_v18 = vsel %vm439_vm11, %v419_v14, %v445_v16 }
 0x1e4   : > { %v468_v20 = vpack.c.bf16 %v451_v18, %v450_v17  ;;  %v423_v21 = vpop.f32.mrb[8].mxu1  ;;  %v499_v17 = vpop.permute.xlu1 %498 }
 0x1e5   : > { %v424_v22 = vadd.f32 %v423_v21, %v339_v19  ;;  %v845_v23 = vpop.f32.mrb[9].mxu1 }
 0x1e6   : > { %v426_v25 = vpop.f32.mrb[10].mxu1  ;;  %852 = vmatpush3.bf16.msra.mxu0 %v468_v20 }
 0x1e7   : > { %v446_v26 = vmul.f32 0.2, %v424_v22  ;;  %v427_v27 = vadd.f32 %v426_v25, %v344_v24  ;;  %v846_v28 = vpop.f32.mrb[11].mxu1  ;;  %853 = vmatprep.subr.bf16.mxu0 %v945_v0  ;;  %vm440_vm12 = vcmp.gt.f32.partialorder %v424_v22, 0.0 }
 0x1e9   : > { %vm441_vm13 = vcmp.gt.f32.partialorder %v427_v27, 0.0  ;;  %v447_v29 = vmul.f32 0.2, %v427_v27  ;;  %v452_v30 = vsel %vm440_vm12, %v424_v22, %v446_v26  ;;  %v600_v26 = vld [vmem:[%s1156_s0 + $0x48] sm:$0xf] }
 0x1eb   : > { %v453_v31 = vsel %vm441_vm13, %v427_v27, %v447_v29  ;;  %v608_v27 = vpop.permute.xlu0 %607 }
 0x1ec   : > { %v469_v33 = vpack.c.bf16 %v453_v31, %v452_v30  ;;  %v431_v34 = vpop.f32.mrb[12].mxu1 }
 0x1ed   : > { %v432_v35 = vadd.f32 %v431_v34, %v349_v32  ;;  %v849_v36 = vpop.f32.mrb[13].mxu1 }
 0x1ee   : > { %v434_v38 = vpop.f32.mrb[14].mxu1  ;;  %854 = vmatpush3.bf16.msra.mxu0 %v469_v33 }
 0x1ef   : > { %v448_v39 = vmul.f32 0.2, %v432_v35  ;;  %v435_v40 = vadd.f32 %v434_v38, %v354_v37  ;;  %v850_v41 = vpop.f32.mrb[15].mxu1  ;;  %855 = vmatprep.subr.bf16.mxu0 %v945_v0  ;;  %vm442_vm14 = vcmp.gt.f32.partialorder %v432_v35, 0.0  ;;  %v656_v38 = vrot.slane %v1011_v4, 4 }
 0x1f1   : > { %vm443_vm15 = vcmp.gt.f32.partialorder %v435_v40, 0.0  ;;  %v449_v42 = vmul.f32 0.2, %v435_v40  ;;  %v454_v43 = vsel %vm442_vm14, %v432_v35, %v448_v39 }
 0x1f3   : > { %v455_v44 = vsel %vm443_vm15, %v435_v40, %v449_v42 }
 0x1f4   : > { %v470_v45 = vpack.c.bf16 %v455_v44, %v454_v43 }
 0x1f6   : > { %856 = vmatpush3.bf16.msra.mxu0 %v470_v45 }
 0x1f9   : > { %858 = vmatmul.mubr.msk.bf16.vlgmr.msra.gmra.mrb[8].mxu0 %vm371_vm9, %v916_v46 }
 0x1fa   : > { %861 = vmatprep.mubr.msk.bf16.mxu0 %vm946_vm0, %v945_v0 }
 0x201   : > { %862 = vmatmul.mubr.msk.bf16.gmra.mrb[12].mxu0 %vm371_vm9, %v917_v47 }
 0x202   : > { %865 = vmatprep.mubr.msk.bf16.mxu0 %vm946_vm0, %v945_v0 }
 0x209   : > { %866 = vmatmul.mubr.msk.bf16.gmra.mrb[16].mxu0 %vm371_vm9, %v918_v48 }
 0x2cc   : > { %v559_v50 = vpop.f32.mrb[8].mxu0 }
 0x2cd   : > { %v560_v51 = vadd.f32 %v559_v50, %v474_v49  ;;  %v859_v52 = vpop.f32.mrb[9].mxu0 }
 0x2ce   : > { %v562_v54 = vpop.f32.mrb[10].mxu0 }
 0x2cf   : > { %v588_v55 = vmul.f32 0.2, %v560_v51  ;;  %v563_v56 = vadd.f32 %v562_v54, %v479_v53  ;;  %v860_v57 = vpop.f32.mrb[11].mxu0  ;;  %vm582_vm1 = vcmp.gt.f32.partialorder %v560_v51, 0.0 }
 0x2d1   : > { %vm583_vm2 = vcmp.gt.f32.partialorder %v563_v56, 0.0  ;;  %v589_v58 = vmul.f32 0.2, %v563_v56  ;;  %v594_v59 = vsel %vm582_vm1, %v560_v51, %v588_v55 }
 0x2d3   : > { %v595_v60 = vsel %vm583_vm2, %v563_v56, %v589_v58 }
 0x2d4   : > { %v602_v62 = vpack.c.bf16 %v595_v60, %v594_v59  ;;  %v567_v63 = vpop.f32.mrb[12].mxu0 }
 0x2d5   : > { %v568_v1 = vadd.f32 %v567_v63, %v484_v61  ;;  %v863_v2 = vpop.f32.mrb[13].mxu0 }
 0x2d6   : > { %v570_v5 = vpop.f32.mrb[14].mxu0  ;;  %870 = vmatpush3.bf16.msra.mxu1 %v602_v62 }
 0x2d7   : > { %v590_v6 = vmul.f32 0.2, %v568_v1  ;;  %v571_v7 = vadd.f32 %v570_v5, %v489_v3  ;;  %v864_v8 = vpop.f32.mrb[15].mxu0  ;;  %871 = vmatprep.subr.bf16.mxu1 %v945_v0  ;;  %vm584_vm0 = vcmp.gt.f32.partialorder %v568_v1, 0.0 }
 0x2d9   : > { %vm585_vm3 = vcmp.gt.f32.partialorder %v571_v7, 0.0  ;;  %v591_v9 = vmul.f32 0.2, %v571_v7  ;;  %v596_v10 = vsel %vm584_vm0, %v568_v1, %v590_v6 }
 0x2db   : > { %v597_v11 = vsel %vm585_vm3, %v571_v7, %v591_v9 }
 0x2dc   : > { %v603_v13 = vpack.c.bf16 %v597_v11, %v596_v10  ;;  %v575_v14 = vpop.f32.mrb[16].mxu0 }
 0x2dd   : > { %v576_v15 = vadd.f32 %v575_v14, %v494_v12  ;;  %v867_v16 = vpop.f32.mrb[17].mxu0 }
 0x2de   : > { %v578_v18 = vpop.f32.mrb[18].mxu0  ;;  %872 = vmatpush3.bf16.msra.mxu1 %v603_v13 }
 0x2df   : > { %v592_v19 = vmul.f32 0.2, %v576_v15  ;;  %v579_v20 = vadd.f32 %v578_v18, %v499_v17  ;;  %v868_v21 = vpop.f32.mrb[19].mxu0  ;;  %873 = vmatprep.subr.bf16.mxu1 %v945_v0  ;;  %vm586_vm4 = vcmp.gt.f32.partialorder %v576_v15, 0.0 }
 0x2e1   : > { %vm587_vm5 = vcmp.gt.f32.partialorder %v579_v20, 0.0  ;;  %v593_v22 = vmul.f32 0.2, %v579_v20  ;;  %v598_v23 = vsel %vm586_vm4, %v576_v15, %v592_v19 }
 0x2e3   : > { %v599_v24 = vsel %vm587_vm5, %v579_v20, %v593_v22 }
 0x2e4   : > { %v604_v25 = vpack.c.bf16 %v599_v24, %v598_v23 }
 0x2e6   : > { %874 = vmatpush3.bf16.msra.mxu1 %v604_v25 }
 0x2e9   : > { %876 = vmatmul.mubr.msk.bf16.vlgmr.msra.gmra.mrb[16].mxu1 %vm371_vm9, %v600_v26 }
 0x3bc   : > { %v647_v28 = vpop.f32.mrb[16].mxu1 }
 0x3bd   : > { %v648_v29 = vadd.f32 %v647_v28, %v608_v27  ;;  %v877_v30 = vpop.f32.mrb[17].mxu1 }
 0x3be   : > { %v650_v0 = vpop.f32.mrb[18].mxu1 }
 0x3bf   : > { %v653_v31 = vmul.f32 1.442695, %v648_v29  ;;  %v666_v32 = vsel %vm665_vm6, %v648_v29, 0.0  ;;  %v878_v33 = vpop.f32.mrb[19].mxu1  ;;  %v660_v43 = vrot.slane %v648_v29, 4 }
 0x3c0   : > { %v667_v34 = vrot.slane %v666_v32, 4 }
 0x3c1   : > { %919 = vpow2.f32 %v653_v31 }
 0x3c2   : > { %v668_v35 = vadd.f32 %v667_v34, %v666_v32 }
 0x3c4   : > { %v669_v36 = vrot.slane %v668_v35, 2 }
 0x3c6   : > { %v670_v37 = vadd.f32 %v669_v36, %v668_v35 }
 0x3c8   : > { %v671_v39 = vrot.slane %v670_v37, 1 }
 0x3ca   : > { %v672_v40 = vadd.f32 %v671_v39, %v670_v37  ;;  %680 = sbr.rel (!%p990_p4) target bundleno = 985 (0x3d9), region = 36 }
 0x3cb   : > { %v920_v41 = vpop.eup %919 }
 0x3cc   : > { %v658_v42 = vmul.f32 %v920_v41, %v656_v38  ;;  %673 = vst [vmem:[%s1021_s9 + $0x8] sm:$0x1] %v672_v40 }
 0x3ce   : > { %v662_v44 = vadd.f32 %v660_v43, %v658_v42 }
 0x3d0   : > { %664 = vst [vmem:[%s1021_s9 + $0x4] sm:$0xf] %v662_v44 }
 0x3d3   : > { %v714_v46 = vld [vmem:[%s1021_s9 + $0x8] sm:$0xff] }
 0x3d4   : > { %715 = vst [vmem:[%s682_s26 + $0x10] sm:$0xff] %v714_v46 }
 0x3d7   : > { %v712_v45 = vld [vmem:[%s1021_s9] sm:$0xff] }
 0x3d8   : > { %713 = vst [vmem:[%s682_s26] sm:$0xff] %v712_v45 }
 0x3d9 PF: > { %p10_p8 = scmp.ge.s32.totalorder %s981_s16, 4   ;;  %s1161_s12 = smov %s939_s13 }
 0x3da   : > { %s1162_s13 = smov %s988_s19  ;;  %s1163_s14 = smov %s981_s16 }
 0x3db   :  { %12 = sbr.rel (!%p10_p8) target bundleno = 2 (0x2), region = 100 }

</bundles_post_ra>
